<compile_context>
chip_gen: v5e
topology: v5e:2x2
jax: 0.10.0
libtpu: 0.0.40
codegen_flags: <defaults>
</compile_context>

<pallas_src>
import jax
import jax.numpy as jnp
from jax import lax
from jax.experimental import pallas as pl
from jax.experimental.pallas import tpu as pltpu


# --------------------------------------------------------------------------- utils
def _round_up(x, m):
    return ((x + m - 1) // m) * m


def _vmem_budget_bytes():
    """Generation-aware VMEM budget (~3/4 of per-core VMEM):
    v5e/v6e 128 MiB -> ~96 MiB, v7x 64 MiB -> ~48 MiB.
    Falls back to the conservative v7x figure if the query is unavailable."""
    cap = 64 * 1024 * 1024
    try:
        info = pltpu.get_tpu_info()
        cap = int(getattr(info, "vmem_capacity_bytes", cap)) or cap
    except Exception:
        pass
    return min(cap * 3 // 4, 112 * 1024 * 1024)


def _pick_tile(total, unit, max_elems):
    """Largest legal tile: full dim if it fits, else the largest divisor of `total`
    that is a multiple of `unit` and <= max_elems (falls back to the full dim)."""
    if total <= max_elems:
        return total
    d = (max_elems // unit) * unit
    while d >= unit:
        if total % d == 0:
            return d
        d -= unit
    return total


def _pick_tb(B, max_rows):
    """Batch tile: multiple of 8 (or the whole batch).  For large B keep >=2 blocks
    so the 'parallel' batch grid axis feeds both v7x TensorCores."""
    if B <= 8:
        return B
    cap = min(max_rows, max(8, ((B // 2) // 8) * 8))
    return _pick_tile(B, 8, cap)


def _resident_spec(shape):
    """Constant-index block: DMA'd once, stays resident for the whole grid.
    Request a single buffer (no wasted double buffer) when supported."""
    idx_map = lambda b, s: (0,) * len(shape)
    try:
        return pl.BlockSpec(shape, idx_map, pipeline_mode=pl.Buffered(buffer_count=1))
    except Exception:  # older JAX without pipeline_mode / Buffered
        return pl.BlockSpec(shape, idx_map)


# --------------------------------------------------------------------------- kernels
def _fc_epilogue(pooled, w1_ref, b1_ref, w2_ref, b2_ref, out_ref):
    """pooled = max_S(embedding), f32.  tanh is applied here (monotonic => identical
    to max(tanh(.))), then relu -> fc1 -> relu -> fc2.  Lane-dense output store."""
    h = jnp.maximum(jnp.tanh(pooled), 0.0)
    h1 = jnp.dot(h, w1_ref[...], preferred_element_type=jnp.float32) + b1_ref[...]
    h1 = jnp.maximum(h1, 0.0)
    out = jnp.dot(h1, w2_ref[...], preferred_element_type=jnp.float32) + b2_ref[...]
    out_ref[...] = out.astype(out_ref.dtype)


def _fused_gather_kernel(ids_ref, table_ref, w1_ref, b1_ref, w2_ref, b2_ref,
                         out_ref, acc_ref):
    # ids_ref: (tb, ts) int32   table_ref: (Vp, Ep) f32 resident
    # acc_ref: (tb, Ep) f32 running max over the sequence axis
    s = pl.program_id(1)

    @pl.when(s == 0)
    def _():
        acc_ref[...] = jnp.full_like(acc_ref, -jnp.inf)

    tb, ts = ids_ref.shape
    Vp, Ep = table_ref.shape
    # Gather = one-hot @ table on the MXU (exact in f32).
    eq = (ids_ref[...][:, :, None] ==
          lax.broadcasted_iota(jnp.int32, (tb, ts, Vp), 2))
    onehot = jnp.where(eq, 1.0, 0.0).astype(jnp.float32)            # (tb, ts, Vp)
    emb = jnp.dot(onehot.reshape(tb * ts, Vp), table_ref[...],
                  preferred_element_type=jnp.float32).reshape(tb, ts, Ep)
    acc_ref[...] = jnp.maximum(acc_ref[...], jnp.max(emb, axis=1))

    @pl.when(s == pl.num_programs(1) - 1)
    def _():
        _fc_epilogue(acc_ref[...], w1_ref, b1_ref, w2_ref, b2_ref, out_ref)


def _streaming_kernel(emb_ref, w1_ref, b1_ref, w2_ref, b2_ref, out_ref, acc_ref):
    # emb_ref: (tb, ts, Es) tile of pre-gathered embeddings (bf16 by default)
    # acc_ref: (tb, Es) running max in the stream dtype (max is a compare)
    s = pl.program_id(1)

    @pl.when(s == 0)
    def _():
        acc_ref[...] = jnp.full_like(acc_ref, -jnp.inf)

    acc_ref[...] = jnp.maximum(acc_ref[...], jnp.max(emb_ref[...], axis=1))

    @pl.when(s == pl.num_programs(1) - 1)
    def _():
        _fc_epilogue(acc_ref[...].astype(jnp.float32),
                     w1_ref, b1_ref, w2_ref, b2_ref, out_ref)


# --------------------------------------------------------------------------- wrapper
def prepare_params(embed_table, w1, b1, w2, b2):
    """One-time (hoisted) lane-dense zero-padding of the module parameters."""
    embed_table = jnp.asarray(embed_table, jnp.float32)
    w1 = jnp.asarray(w1, jnp.float32)
    b1 = jnp.asarray(b1, jnp.float32)
    w2 = jnp.asarray(w2, jnp.float32)
    b2 = jnp.asarray(b2, jnp.float32)
    V, E = embed_table.shape
    H = w1.shape[1]
    L = w2.shape[1]
    Vp, Ep = _round_up(V, 128), _round_up(E, 128)
    Hp, Lp = _round_up(H, 128), _round_up(L, 128)
    Es = _round_up(E, 8)  # streaming path keeps E near-native (no lane padding)

    table_p = jnp.zeros((Vp, Ep), jnp.float32).at[:V, :E].set(embed_table)
    emb_tbl_s = jnp.zeros((V, Es), jnp.float32).at[:, :E].set(embed_table)
    w1p = jnp.zeros((Ep, Hp), jnp.float32).at[:E, :H].set(w1)
    w1s = jnp.zeros((Es, Hp), jnp.float32).at[:E, :H].set(w1)
    b1p = jnp.zeros((1, Hp), jnp.float32).at[0, :H].set(b1)
    w2p = jnp.zeros((Hp, Lp), jnp.float32).at[:H, :L].set(w2)
    b2p = jnp.zeros((1, Lp), jnp.float32).at[0, :L].set(b2)
    return dict(table_p=table_p, emb_tbl_s=emb_tbl_s, w1p=w1p, w1s=w1s,
                b1p=b1p, w2p=w2p, b2p=b2p, V=V, E=E, H=H, L=L)


def pooling_forward(token_ids, params, *, force_streaming=False,
                    stream_dtype=jnp.bfloat16, tb=None, ts=None):
    """token_ids: (B, S) int32; params: output of prepare_params().
    Returns (B, L) float32 logits (eval-mode forward of the Pooling module)."""
    token_ids = token_ids.astype(jnp.int32)
    B, S = token_ids.shape
    V, E, H, L = params["V"], params["E"], params["H"], params["L"]
    table_p, w1p, b1p, w2p, b2p = (params["table_p"], params["w1p"], params["b1p"],
                                   params["w2p"], params["b2p"])
    emb_tbl_s, w1s = params["emb_tbl_s"], params["w1s"]
    Vp, Ep = table_p.shape
    Hp = w1p.shape[1]
    Lp = w2p.shape[1]
    Es = w1s.shape[0]

    budget = _vmem_budget_bytes()
    weights_bytes = 4 * (Ep * Hp + Hp + Hp * Lp + Lp)
    table_bytes = 4 * Vp * Ep
    # Fused path when the resident table+weights leave plenty of VMEM headroom and
    # the vocab is small enough that the one-hot MXU gather beats streaming.
    use_fused = (not force_streaming
                 and Vp <= 4096
                 and table_bytes + weights_bytes <= budget // 3)

    if tb is None:
        tb = _pick_tb(B, 512)
    assert B % tb == 0 and (tb % 8 == 0 or tb == B), "bad batch tile"

    cparams = pltpu.CompilerParams(
        dimension_semantics=("parallel", "arbitrary"),
        vmem_limit_bytes=budget,
    )

    if use_fused:
        if ts is None:
            # keep one-hot/emb intermediates (~tb*ts*(Vp+Ep)*4 bytes) around ~8 MiB
            ts_max = max(128, (8 * 2 ** 20) // max(1, tb * (Vp + Ep) * 4))
            ts = _pick_tile(S, 128, min(S, ts_max))
        assert S % ts == 0 and (ts % 128 == 0 or ts == S), "bad seq tile (fused)"
        grid = (B // tb, S // ts)

        cost = pl.CostEstimate(
            flops=2 * B * S * Vp * Ep + 2 * B * (Ep * Hp + Hp * Lp),
            transcendentals=B * Ep,
            bytes_accessed=4 * (B * S + Vp * Ep + Ep * Hp + Hp * Lp + B * Lp),
        )
        out_padded = pl.pallas_call(
            _fused_gather_kernel,
            out_shape=jax.ShapeDtypeStruct((B, Lp), jnp.float32),
            grid_spec=pltpu.PrefetchScalarGridSpec(
                num_scalar_prefetch=0,
                grid=grid,
                in_specs=[
                    pl.BlockSpec((tb, ts), lambda b, s: (b, s)),  # token ids
                    _resident_spec((Vp, Ep)),                     # embedding table
                    _resident_spec((Ep, Hp)),
                    _resident_spec((1, Hp)),
                    _resident_spec((Hp, Lp)),
                    _resident_spec((1, Lp)),
                ],
                out_specs=pl.BlockSpec((tb, Lp), lambda b, s: (b, 0)),
                scratch_shapes=[pltpu.VMEM((tb, Ep), jnp.float32)],
            ),
            compiler_params=cparams,
            cost_estimate=cost,
        )(token_ids, table_p, w1p, b1p, w2p, b2p)
        return out_padded[:, :L]

    # -------- streaming fallback (large vocab): XLA gather, bf16 stream --------
    # TODO(synk): lane-pack 128//E sequence positions per vreg row when E < 128.
    emb = jnp.take(emb_tbl_s, token_ids, axis=0).astype(stream_dtype)  # (B, S, Es)
    isz = jnp.dtype(stream_dtype).itemsize
    unit = 16 if isz == 2 else 8
    if ts is None:
        # ~4-8 MiB per double-buffered emb tile keeps the DMA near the HBM roofline
        ts_max = max(unit, (8 * 2 ** 20) // max(1, 2 * tb * Es * isz))
        ts = _pick_tile(S, unit, min(S, ts_max))
    assert S % ts == 0 and (ts % unit == 0 or ts == S), "bad seq tile (streaming)"
    grid = (B // tb, S // ts)

    cost = pl.CostEstimate(
        flops=B * S * Es + 2 * B * (Es * Hp + Hp * Lp),
        transcendentals=B * Es,
        bytes_accessed=isz * B * S * Es + 4 * (Es * Hp + Hp * Lp + B * Lp),
    )
    out_padded = pl.pallas_call(
        _streaming_kernel,
        out_shape=jax.ShapeDtypeStruct((B, Lp), jnp.float32),
        grid_spec=pltpu.PrefetchScalarGridSpec(
            num_scalar_prefetch=0,
            grid=grid,
            in_specs=[
                # (sweep pipeline_mode=pl.Buffered(3) here if the tile ends up tiny)
                pl.BlockSpec((tb, ts, Es), lambda b, s: (b, s, 0)),
                _resident_spec((Es, Hp)),
                _resident_spec((1, Hp)),
                _resident_spec((Hp, Lp)),
                _resident_spec((1, Lp)),
            ],
            out_specs=pl.BlockSpec((tb, Lp), lambda b, s: (b, 0)),
            scratch_shapes=[pltpu.VMEM((tb, Es), stream_dtype)],
        ),
        compiler_params=cparams,
        cost_estimate=cost,
    )(emb, w1s, b1p, w2p, b2p)
    return out_padded[:, :L]


# --------------------------------------------------------------------------- demo
if __name__ == "__main__":
    # Small, module-consistent shapes; S and the explicit ts values give multi-step
    # reduction grids so the running-max accumulator path is exercised on both paths.
    B, S = 2, 256        # batch, sequence length
    V = 50               # vocab.m_size
    E = 32               # opts.embed_size
    H = E // 2           # linear1 output
    L = 5                # label_vocab.m_size
    embed_uniform_init = 0.1

    key = jax.random.PRNGKey(0)
    k_emb, k_w1, k_b1, k_w2, k_b2, k_tok = jax.random.split(key, 6)

    embed_table = jax.random.uniform(
        k_emb, (V, E), jnp.float32, -embed_uniform_init, embed_uniform_init)
    bound1 = 1.0 / (E ** 0.5)
    w1 = jax.random.uniform(k_w1, (E, H), jnp.float32, -bound1, bound1)
    b1 = jax.random.uniform(k_b1, (H,), jnp.float32, -bound1, bound1)
    bound2 = 1.0 / (H ** 0.5)
    w2 = jax.random.uniform(k_w2, (H, L), jnp.float32, -bound2, bound2)
    b2 = jax.random.uniform(k_b2, (L,), jnp.float32, -bound2, bound2)

    token_ids = jax.random.randint(k_tok, (B, S), 0, V, dtype=jnp.int32)

    # Padding hoisted out of the forward (done once).
    params = prepare_params(embed_table, w1, b1, w2, b2)

    # Reference in plain JAX (same math as the PyTorch module in eval mode).
    emb = jnp.take(embed_table, token_ids, axis=0)
    ref = jnp.max(jnp.tanh(emb), axis=1)
    ref = jnp.maximum(ref, 0.0) @ w1 + b1
    ref = jnp.maximum(ref, 0.0) @ w2 + b2

    # 1) Fused-gather path (default for this vocab size): exact f32.
    out_fused = jax.block_until_ready(pooling_forward(token_ids, params, ts=128))
    assert out_fused.shape == (B, L)
    assert jnp.allclose(out_fused, ref, atol=1e-5, rtol=1e-5)

    # 2) Streaming fallback (bf16 stream per perf guidance -> looser tolerance).
    out_stream = jax.block_until_ready(
        pooling_forward(token_ids, params, force_streaming=True, ts=64))
    assert out_stream.shape == (B, L)
    assert jnp.allclose(out_stream, ref, atol=2e-2, rtol=2e-2)

    print("KERNEL_OK")
</pallas_src>

<mosaic_0001>
module attributes {stable_mosaic.version = 11 : i64} {
  func.func @_fused_gather_kernel(%arg0: i32, %arg1: i32, %arg2: memref<2x128xi32, #tpu.memory_space<vmem>>, %arg3: memref<128x128xf32, #tpu.memory_space<vmem>>, %arg4: memref<128x128xf32, #tpu.memory_space<vmem>>, %arg5: memref<1x128xf32, #tpu.memory_space<vmem>>, %arg6: memref<128x128xf32, #tpu.memory_space<vmem>>, %arg7: memref<1x128xf32, #tpu.memory_space<vmem>>, %arg8: memref<2x128xf32, #tpu.memory_space<vmem>>, %arg9: memref<2x128xf32, #tpu.memory_space<vmem>>) attributes {dimension_semantics = [#tpu.dimension_semantics<parallel>, #tpu.dimension_semantics<arbitrary>], iteration_bounds = array<i64: 1, 2>, scalar_prefetch = 0 : i64, scratch_operands = 1 : i64, tpu.core_type = #tpu.core_type<tc>, window_params = [{transform_indices = @transform_0, window_bounds = array<i64: 2, 128>}, {pipeline_mode = #tpu.pipeline_mode<synchronous>, transform_indices = @transform_1, window_bounds = array<i64: 128, 128>}, {pipeline_mode = #tpu.pipeline_mode<synchronous>, transform_indices = @transform_2, window_bounds = array<i64: 128, 128>}, {pipeline_mode = #tpu.pipeline_mode<synchronous>, transform_indices = @transform_3, window_bounds = array<i64: 1, 128>}, {pipeline_mode = #tpu.pipeline_mode<synchronous>, transform_indices = @transform_4, window_bounds = array<i64: 128, 128>}, {pipeline_mode = #tpu.pipeline_mode<synchronous>, transform_indices = @transform_5, window_bounds = array<i64: 1, 128>}, {transform_indices = @transform_6, window_bounds = array<i64: 2, 128>}]} {
    %c0_i32 = arith.constant 0 : i32
    %0 = arith.cmpi eq, %arg1, %c0_i32 : i32
    %1 = arith.extui %0 : i1 to i32
    %c0_i32_0 = arith.constant 0 : i32
    %2 = arith.cmpi ne, %1, %c0_i32_0 : i32
    scf.if %2 {
      %cst_12 = arith.constant 0xFF800000 : f32
      %22 = vector.broadcast %cst_12 : f32 to vector<2x128xf32>
      %c0_13 = arith.constant 0 : index
      %c0_14 = arith.constant 0 : index
      %23 = vector.load %arg9[%c0_13, %c0_14] : memref<2x128xf32, #tpu.memory_space<vmem>>, vector<2x128xf32>
      tpu.vector_store %arg9[%c0_13, %c0_14], %22 {strides = array<i32>} : memref<2x128xf32, #tpu.memory_space<vmem>>, vector<2x128xf32>,
    } else {
    }
    %c0 = arith.constant 0 : index
    %c0_1 = arith.constant 0 : index
    %3 = vector.load %arg2[%c0, %c0_1] : memref<2x128xi32, #tpu.memory_space<vmem>>, vector<2x128xi32>
    %4 = vector.shape_cast %3 : vector<2x128xi32> to vector<2x128x1xi32>
    %5 = tpu.iota {dimensions = array<i32: 2>} : vector<2x128x128xi32>
    %6 = vector.broadcast %4 : vector<2x128x1xi32> to vector<2x128x128xi32>
    %7 = arith.cmpi eq, %6, %5 : vector<2x128x128xi32>
    %cst = arith.constant 1.000000e+00 : f32
    %cst_2 = arith.constant 0.000000e+00 : f32
    %8 = vector.broadcast %cst : f32 to vector<2x128x128xf32>
    %9 = vector.broadcast %cst_2 : f32 to vector<2x128x128xf32>
    %10 = arith.select %7, %8, %9 : vector<2x128x128xi1>, vector<2x128x128xf32>
    %11 = vector.shape_cast %10 : vector<2x128x128xf32> to vector<256x128xf32>
    %c0_3 = arith.constant 0 : index
    %c0_4 = arith.constant 0 : index
    %12 = vector.load %arg3[%c0_3, %c0_4] : memref<128x128xf32, #tpu.memory_space<vmem>>, vector<128x128xf32>
    %cst_5 = arith.constant dense<0.000000e+00> : vector<256x128xf32>
    %13 = tpu.matmul %11, %12, %cst_5 {dimension_numbers = #tpu.dot_dimension_numbers<[1], [0], [0], [1], [0, 0, 1, 1], [], []>} : vector<256x128xf32>, vector<128x128xf32>, vector<256x128xf32> -> vector<256x128xf32>
    %14 = vector.shape_cast %13 : vector<256x128xf32> to vector<2x128x128xf32>
    %c0_6 = arith.constant 0 : index
    %c0_7 = arith.constant 0 : index
    %15 = vector.load %arg9[%c0_6, %c0_7] : memref<2x128xf32, #tpu.memory_space<vmem>>, vector<2x128xf32>
    %cst_8 = arith.constant dense<0xFF800000> : vector<2x128xf32>
    %16 = vector.multi_reduction <maximumf>, %14, %cst_8 [1] : vector<2x128x128xf32> to vector<2x128xf32>
    %17 = arith.maximumf %15, %16 : vector<2x128xf32>
    %c0_9 = arith.constant 0 : index
    %c0_10 = arith.constant 0 : index
    %18 = vector.load %arg9[%c0_9, %c0_10] : memref<2x128xf32, #tpu.memory_space<vmem>>, vector<2x128xf32>
    tpu.vector_store %arg9[%c0_9, %c0_10], %17 {strides = array<i32>} : memref<2x128xf32, #tpu.memory_space<vmem>>, vector<2x128xf32>,
    %c1_i32 = arith.constant 1 : i32
    %19 = arith.cmpi eq, %arg1, %c1_i32 : i32
    %20 = arith.extui %19 : i1 to i32
    %c0_i32_11 = arith.constant 0 : i32
    %21 = arith.cmpi ne, %20, %c0_i32_11 : i32
    scf.if %21 {
      %c0_12 = arith.constant 0 : index
      %c0_13 = arith.constant 0 : index
      %22 = vector.load %arg9[%c0_12, %c0_13] : memref<2x128xf32, #tpu.memory_space<vmem>>, vector<2x128xf32>
      %23 = math.tanh %22 : vector<2x128xf32>
      %cst_14 = arith.constant 0.000000e+00 : f32
      %24 = vector.broadcast %cst_14 : f32 to vector<2x128xf32>
      %25 = arith.maximumf %23, %24 : vector<2x128xf32>
      %c0_15 = arith.constant 0 : index
      %c0_16 = arith.constant 0 : index
      %26 = vector.load %arg4[%c0_15, %c0_16] : memref<128x128xf32, #tpu.memory_space<vmem>>, vector<128x128xf32>
      %cst_17 = arith.constant dense<0.000000e+00> : vector<2x128xf32>
      %27 = tpu.matmul %25, %26, %cst_17 {dimension_numbers = #tpu.dot_dimension_numbers<[1], [0], [0], [1], [0, 0, 1, 1], [], []>} : vector<2x128xf32>, vector<128x128xf32>, vector<2x128xf32> -> vector<2x128xf32>
      %c0_18 = arith.constant 0 : index
      %c0_19 = arith.constant 0 : index
      %28 = vector.load %arg5[%c0_18, %c0_19] : memref<1x128xf32, #tpu.memory_space<vmem>>, vector<1x128xf32>
      %29 = vector.broadcast %28 : vector<1x128xf32> to vector<2x128xf32>
      %30 = arith.addf %27, %29 : vector<2x128xf32>
      %cst_20 = arith.constant 0.000000e+00 : f32
      %31 = vector.broadcast %cst_20 : f32 to vector<2x128xf32>
      %32 = arith.maximumf %30, %31 : vector<2x128xf32>
      %c0_21 = arith.constant 0 : index
      %c0_22 = arith.constant 0 : index
      %33 = vector.load %arg6[%c0_21, %c0_22] : memref<128x128xf32, #tpu.memory_space<vmem>>, vector<128x128xf32>
      %cst_23 = arith.constant dense<0.000000e+00> : vector<2x128xf32>
      %34 = tpu.matmul %32, %33, %cst_23 {dimension_numbers = #tpu.dot_dimension_numbers<[1], [0], [0], [1], [0, 0, 1, 1], [], []>} : vector<2x128xf32>, vector<128x128xf32>, vector<2x128xf32> -> vector<2x128xf32>
      %c0_24 = arith.constant 0 : index
      %c0_25 = arith.constant 0 : index
      %35 = vector.load %arg7[%c0_24, %c0_25] : memref<1x128xf32, #tpu.memory_space<vmem>>, vector<1x128xf32>
      %36 = vector.broadcast %35 : vector<1x128xf32> to vector<2x128xf32>
      %37 = arith.addf %34, %36 : vector<2x128xf32>
      %c0_26 = arith.constant 0 : index
      %c0_27 = arith.constant 0 : index
      %38 = vector.load %arg8[%c0_26, %c0_27] : memref<2x128xf32, #tpu.memory_space<vmem>>, vector<2x128xf32>
      tpu.vector_store %arg8[%c0_26, %c0_27], %37 {strides = array<i32>} : memref<2x128xf32, #tpu.memory_space<vmem>>, vector<2x128xf32>,
    } else {
    }
    return
  }
  func.func @transform_0(%arg0: i32, %arg1: i32) -> (i32, i32) {
    %c0_i32 = arith.constant 0 : i32
    return %arg0, %arg1 : i32, i32
  }
  func.func @transform_1(%arg0: i32, %arg1: i32) -> (i32, i32) {
    %c0_i32 = arith.constant 0 : i32
    %c0_i32_0 = arith.constant 0 : i32
    %c0_i32_1 = arith.constant 0 : i32
    return %c0_i32, %c0_i32_0 : i32, i32
  }
  func.func @transform_2(%arg0: i32, %arg1: i32) -> (i32, i32) {
    %c0_i32 = arith.constant 0 : i32
    %c0_i32_0 = arith.constant 0 : i32
    %c0_i32_1 = arith.constant 0 : i32
    return %c0_i32, %c0_i32_0 : i32, i32
  }
  func.func @transform_3(%arg0: i32, %arg1: i32) -> (i32, i32) {
    %c0_i32 = arith.constant 0 : i32
    %c0_i32_0 = arith.constant 0 : i32
    %c0_i32_1 = arith.constant 0 : i32
    return %c0_i32, %c0_i32_0 : i32, i32
  }
  func.func @transform_4(%arg0: i32, %arg1: i32) -> (i32, i32) {
    %c0_i32 = arith.constant 0 : i32
    %c0_i32_0 = arith.constant 0 : i32
    %c0_i32_1 = arith.constant 0 : i32
    return %c0_i32, %c0_i32_0 : i32, i32
  }
  func.func @transform_5(%arg0: i32, %arg1: i32) -> (i32, i32) {
    %c0_i32 = arith.constant 0 : i32
    %c0_i32_0 = arith.constant 0 : i32
    %c0_i32_1 = arith.constant 0 : i32
    return %c0_i32, %c0_i32_0 : i32, i32
  }
  func.func @transform_6(%arg0: i32, %arg1: i32) -> (i32, i32) {
    %c0_i32 = arith.constant 0 : i32
    %c0_i32_0 = arith.constant 0 : i32
    return %arg0, %c0_i32 : i32, i32
  }
}

</mosaic_0001>

<bundles_post_ra>
// kernel: tpu_custom_call.1
= control target key start
LH: loop header
LB: loop body
LE: loop exit
PB: predicated region body
PF: predicated region fallthrough
CT: control target
= control target key end

     0   :  { %s1716_s0 = inlined_call_operand.hbm [shape: s32[2,256], index: 0, kind: input, shape index: {}]   ;;  %s1717_s1 = inlined_call_operand.hbm [shape: f32[128,128], index: 1, kind: input, shape index: {}]   ;;  %s1718_s2 = inlined_call_operand.hbm [shape: f32[128,128], index: 2, kind: input, shape index: {}]   ;;  %s1719_s3 = inlined_call_operand.vmem [shape: f32[1,128], index: 3, kind: input, shape index: {}]   ;;  %s1720_s4 = inlined_call_operand.hbm [shape: f32[128,128], index: 4, kind: input, shape index: {}]   ;;  %s1721_s5 = inlined_call_operand.vmem [shape: f32[1,128], index: 5, kind: input, shape index: {}]   ;;  %s1722_s6 = inlined_call_operand.hbm [shape: f32[2,128], index: 6, kind: output, shape index: {}]  }
   0x1   :  { %1724 = sst [smem:[#allocation16_spill]] %s1717_s1 }
   0x2   :  { %11 = vsyncpa [#allocation4], 0 }
   0x3   :  { %13 = vsyncpa [#allocation4 + $0x1], 0 }
   0x4   :  { %14 = vsyncpa [#allocation7], 0 }
   0x5   :  { %15 = vsyncpa [#allocation10], 0 }
   0x6   :  { %16 = vsyncpa [#allocation5], 0  ;;  %s1446_s21 = smov 0   ;;  %s1448_s22 = smov 0  }
   0x7   :  { %s1450_s23 = smov 0   ;;  %s1452_s24 = smov 0  }
   0x8   :  { %s1454_s25 = smov 0   ;;  %s1456_s26 = smov 0  }
   0x9 LB: > { %s1723_s27 = sadd.s32 4294967295, %s1401_s26   ;;  %p966_p0 = scmp.ge.s32.totalorder %s1401_s26, 1  ;;  %s1401_s26 = sphi %s1456_s26, %s22_s26   ;;  %s1397_s25 = sphi %s1454_s25, %s1736_s25   ;;  %s1393_s24 = sphi %s1452_s24, %s1735_s24   ;;  %s1389_s23 = sphi %s1450_s23, %s1734_s23   ;;  %s1385_s22 = sphi %s1448_s22, %s1733_s22   ;;  %s1381_s21 = sphi %s1446_s21, %s1732_s21  }
   0xa   : > { %p1480_p1 = scmp.eq.s32.totalorder %s1723_s27, 0  ;;  %p198_p2 = scmp.lt.s32.totalorder %s1401_s26, 3 }
   0xb   : > { %s1726_s1 = sld [smem:[#allocation16_spill]]  ;;  %s1403_s9 = smov [#allocation6]  }
   0xc   : > { %p1488_p3 = pnand %p966_p0, %p198_p2  ;;  %s211_s10 = sshll.u32 %s1403_s9, 4  ;;  %s212_s10 = int_to_ptr.vmem [resolvable:$true] %s211_s10 }
   0xd   : > { %s223_s14 = sshll.u32 %s1718_s2, 4  ;;  %s1404_s15 = smov 128   ;;  %s224_s14 = int_to_ptr.hbm [resolvable:$true] %s223_s14 }
   0xe   : > { %p1082_p4 = pneg %p1488_p3  ;;  %s1405_s16 = smov 8  }
   0xf   : > { %s1406_s17 = smov [#allocation8]   ;;  %s240_s29 = sshll.u32 %s1720_s4, 4  ;;  %s241_s29 = int_to_ptr.hbm [resolvable:$true] %s240_s29 }
  0x10   : > { %p1496_p5 = pnand %p1082_p4, %p1480_p1  ;;  %s225_s18 = sshll.u32 %s1406_s17, 4  ;;  %s226_s18 = int_to_ptr.vmem [resolvable:$true] %s225_s18 }
  0x11   : > { %s209_s7 = sshll.u32 %s1726_s1, 4  ;;  %s1407_s30 = smov [#allocation9]   ;;  %s210_s7 = int_to_ptr.hbm [resolvable:$true] %s209_s7 }
  0x12   : > { %1085 = dma.hbm_to_vmem [thread:$0]  (!%p1496_p5), %s210_s7, 2048, %s212_s10, [#allocation7], %s1404_s15, %s1404_s15, %s1405_s16  }
  0x13   : > { %1088 = dma.hbm_to_vmem [thread:$0]  (!%p1496_p5), %s224_s14, 2048, %s226_s18, [#allocation7], %s1404_s15, %s1404_s15, %s1405_s16  }
  0x14   : > { %s242_s9 = sshll.u32 %s1407_s30, 4  ;;  %s31_s7 = sadd.s32 1, %s1397_s25  ;;  %s243_s9 = int_to_ptr.vmem [resolvable:$true] %s242_s9 }
  0x15   : > { %1091 = dma.hbm_to_vmem [thread:$0]  (!%p1496_p5), %s241_s29, 2048, %s243_s9, [#allocation10], %s1404_s15, %s1404_s15, %s1405_s16  }
  0x16   : > { %p32_p6 = scmp.ge.s32.totalorder %s31_s7, 2  ;;  %p50_p7 = scmp.ne.s32.totalorder %s1389_s23, %s1385_s22 }
  0x17   : > { %p51_p8 = scmp.eq.s32.totalorder %s1401_s26, 0  ;;  %s43_s10 = sadd.s32 1, %s1389_s23 }
  0x18   : > { %s1738_s7 = smov (%p32_p6, %s31_s7), 0  ;;  %p56_p9 = scmp.ne.s32.totalorder %s1385_s22, %s1381_s21 }
  0x19   : > { %s39_s12 = ssub.s32 %s1397_s25, %s1738_s7  ;;  %p1523_p10 = por %p51_p8, %p50_p7 }
  0x1a   : > { %p41_p11 = scmp.eq.s32.totalorder %s39_s12, 0  ;;  %p1529_p12 = por %p1480_p1, %p56_p9 }
  0x1b   : > { %s259_s14 = sand.u32 1, %s1389_s23   ;;  %s972_s15 = sshll.u32 %s1397_s25, 1 }
  0x1c   : > { %s1536_s16 = scalar_select %p41_p11, %s1389_s23, %s43_s10  }
  0x1d   : > { %p1099_p13 = scmp.lt.s32.totalorder %s1401_s26, 2  ;;  %s971_s17 = sshll.u32 %s259_s14, 1 }
  0x1e   : > { %s269_s19 = scalar_lea.hbm %s1716_s0, %s972_s15  ;;  %s263_s29 = scalar_lea.vmem [#allocation3], %s971_s17 }
  0x1f   : > { %s271_s20 = sshll.u32 %s269_s19, 4  ;;  %s273_s30 = sshll.u32 %s263_s29, 4  ;;  %s272_s20 = int_to_ptr.hbm [resolvable:$true] %s271_s20  ;;  %s274_s30 = int_to_ptr.vmem [resolvable:$true] %s273_s30 }
  0x20   : > { %p1093_p0 = pnand %p1099_p13, %p1523_p10  ;;  %s260_s9 = scalar_lea.sflag [#allocation4], %s259_s14 }
  0x21   : > { %282 = sbr.rel (%p1488_p3) target bundleno = 785 (0x311), region = 44  ;;  %s284_s10 = sand.u32 (!%p1488_p3), 1, %s1385_s22  }
  0x22   : > { %1095 = dma.hbm_to_vmem [thread:$0]  (!%p1093_p0), %s272_s20, 32, %s274_s30, %s260_s9  }
  0x23   : > { %s974_s12 = sshll.u32 (!%p1488_p3), %s284_s10, 1  ;;  %s285_s27 = scalar_lea.sflag (!%p1488_p3), [#allocation4], %s284_s10 }
  0x24   : > { %s288_s1 = scalar_lea.vmem (!%p1488_p3), [#allocation3], %s974_s12 }
  0x26   : > { %1364 = dma.done.wait (%p1529_p12), %s285_s27, 32  }
  0x27   : > { %1366 = vsyncadd (%p1529_p12), %s285_s27, 4294967264 }
  0x28   : > { %1368 = dma.done.wait (%p1480_p1), [#allocation7], 4096  }
  0x29   : > { %1370 = vsyncadd (%p1480_p1), [#allocation7], 4294963200 }
  0x2a   : > { %1372 = dma.done.wait (%p1480_p1), [#allocation10], 2048  }
  0x2b   : > { %1374 = vsyncadd (%p1480_p1), [#allocation10], 4294965248  ;;  %p978_p2 = scmp.ne.s32.totalorder %s1393_s24, 0 }
  0x2d   : > { %331 = sbr.rel (%p978_p2) target bundleno = 52 (0x34), region = 64 }
  0x32   : > { %v1408_v0 = vmov -inf  }
  0x33   : > { %332 = vst [vmem:[#allocation2] sm:$0x3] %v1408_v0 }
  0x34 PF: > { %v335_v1 = vlaneseq  ;;  %v333_v4 = vld [vmem:[%s288_s1] sm:$0x3]  ;;  %v608_v14 = vld [vmem:[#allocation6 + $0x70] sm:$0xff]  ;;  %v607_v15 = vld [vmem:[#allocation6 + $0x68] sm:$0xff]  ;;  %v1409_v38 = vmov 1.0   ;;  %p1011_p1 = scmp.ne.s32.totalorder %s1393_s24, 1 }
  0x35   : > { %v1565_v5 = vperm.slane %v333_v4, 1  ;;  %v1567_v6 = vperm.slane %v333_v4, 0  ;;  %v609_v13 = vld [vmem:[#allocation6 + $0x78] sm:$0xff]  ;;  %v606_v16 = vld [vmem:[#allocation6 + $0x60] sm:$0xff]  ;;  %v604_v18 = vld [vmem:[#allocation6 + $0x50] sm:$0xff] }
  0x36   : > { %v1561_v2 = vshrl.u32 %v335_v1, 7  ;;  %1017 = vmatpush.msra.mxu2 %v609_v13  ;;  %610 = vmatpush.msra.mxu0 %v609_v13  ;;  %v605_v17 = vld [vmem:[#allocation6 + $0x58] sm:$0xff]  ;;  %v603_v19 = vld [vmem:[#allocation6 + $0x48] sm:$0xff]  ;;  %v602_v21 = vld [vmem:[#allocation6 + $0x40] sm:$0xff]  ;;  %v1607_v34 = vand.u32 127, %v335_v1 }
  0x37   : > { %1016 = vmatpush.msra.mxu1 %v609_v13  ;;  %1018 = vmatpush.msra.mxu3 %v609_v13  ;;  %v601_v22 = vld [vmem:[#allocation6 + $0x38] sm:$0xff]  ;;  %v600_v23 = vld [vmem:[#allocation6 + $0x30] sm:$0xff]  ;;  %v599_v25 = vld [vmem:[#allocation6 + $0x28] sm:$0xff] }
  0x38   : > { %1161 = vset.pattern.permute.xlu0 %v1561_v2  ;;  %v343_v3 = vadd.s32 8, %v1561_v2  ;;  %v385_v7 = vadd.s32 64, %v1561_v2  ;;  %v349_v8 = vadd.s32 16, %v1561_v2  ;;  %v391_v9 = vadd.s32 72, %v1561_v2  ;;  %1020 = vmatpush.msra.mxu2 %v608_v14  ;;  %v598_v26 = vld [vmem:[#allocation6 + $0x20] sm:$0xff]  ;;  %v597_v27 = vld [vmem:[#allocation6 + $0x18] sm:$0xff] }
  0x39   : > { %v397_v10 = vadd.s32 80, %v1561_v2  ;;  %v355_v11 = vadd.s32 24, %v1561_v2  ;;  %v361_v12 = vadd.s32 32, %v1561_v2  ;;  %611 = vmatpush.msra.mxu0 %v608_v14  ;;  %1019 = vmatpush.msra.mxu1 %v608_v14  ;;  %v1590_v20 = vadd.s32 96, %v1561_v2  ;;  %v596_v28 = vld [vmem:[#allocation6 + $0x10] sm:$0xff]  ;;  %v595_v29 = vld [vmem:[#allocation6 + $0x8] sm:$0xff] }
  0x3a   : > { %1164 = vset.pattern.permute.xlu2 %v343_v3  ;;  %1162 = vset.pattern.permute.xlu1 %v343_v3  ;;  %v403_v24 = vadd.s32 88, %v1561_v2  ;;  %v594_v30 = vld [vmem:[#allocation6] sm:$0xff]  ;;  %v367_v31 = vadd.s32 40, %v1561_v2  ;;  %v379_v32 = vadd.s32 56, %v1561_v2  ;;  %v373_v36 = vadd.s32 48, %v1561_v2 }
  0x3b   : > { %1021 = vmatpush.msra.mxu3 %v608_v14  ;;  %1023 = vmatpush.msra.mxu2 %v607_v15  ;;  %v415_v37 = vadd.s32 104, %v1561_v2  ;;  %v427_v41 = vadd.s32 120, %v1561_v2  ;;  %v421_v45 = vadd.s32 112, %v1561_v2 }
  0x3c   : > { %612 = vmatpush.msra.mxu0 %v607_v15  ;;  %1022 = vmatpush.msra.mxu1 %v607_v15 }
  0x3d   : > { %1024 = vmatpush.msra.mxu3 %v607_v15  ;;  %1026 = vmatpush.msra.mxu2 %v606_v16 }
  0x3e   : > { %613 = vmatpush.msra.mxu0 %v606_v16  ;;  %1025 = vmatpush.msra.mxu1 %v606_v16 }
  0x3f   : > { %1027 = vmatpush.msra.mxu3 %v606_v16  ;;  %1029 = vmatpush.msra.mxu2 %v605_v17 }
  0x40   : > { %436 = vperm.xlu0 %1161, %v1565_v5   ;;  %614 = vmatpush.msra.mxu0 %v605_v17 }
  0x41   : > { %1028 = vmatpush.msra.mxu1 %v605_v17  ;;  %1030 = vmatpush.msra.mxu3 %v605_v17 }
  0x42   : > { %442 = vperm.xlu1 %1162, %v1565_v5   ;;  %345 = vperm.xlu2 %1164, %v1567_v6  }
  0x43   : > { %1032 = vmatpush.msra.mxu2 %v604_v18  ;;  %615 = vmatpush.msra.mxu0 %v604_v18 }
  0x44   : > { %1031 = vmatpush.msra.mxu1 %v604_v18  ;;  %1033 = vmatpush.msra.mxu3 %v604_v18 }
  0x45   : > { %1035 = vmatpush.msra.mxu2 %v603_v19  ;;  %616 = vmatpush.msra.mxu0 %v603_v19 }
  0x46   : > { %1034 = vmatpush.msra.mxu1 %v603_v19  ;;  %1036 = vmatpush.msra.mxu3 %v603_v19 }
  0x47   : > { %1038 = vmatpush.msra.mxu2 %v602_v21  ;;  %617 = vmatpush.msra.mxu0 %v602_v21 }
  0x48   : > { %339 = vperm.xlu0 %1161, %v1567_v6   ;;  %1037 = vmatpush.msra.mxu1 %v602_v21 }
  0x49   : > { %1041 = vmatpush.msra.mxu2 %v601_v22  ;;  %618 = vmatpush.msra.mxu0 %v601_v22 }
  0x4a   : > { %1163 = vset.pattern.permute.xlu1 %v385_v7  ;;  %1165 = vset.pattern.permute.xlu2 %v385_v7 }
  0x4b   : > { %1044 = vmatpush.msra.mxu2 %v600_v23  ;;  %619 = vmatpush.msra.mxu0 %v600_v23 }
  0x4c   : > { %1040 = vmatpush.msra.mxu1 %v601_v22  ;;  %1039 = vmatpush.msra.mxu3 %v602_v21 }
  0x4d   : > { %1047 = vmatpush.msra.mxu2 %v599_v25  ;;  %620 = vmatpush.msra.mxu0 %v599_v25 }
  0x4e   : > { %1043 = vmatpush.msra.mxu1 %v600_v23  ;;  %1042 = vmatpush.msra.mxu3 %v601_v22 }
  0x4f   : > { %1050 = vmatpush.msra.mxu2 %v598_v26  ;;  %621 = vmatpush.msra.mxu0 %v598_v26 }
  0x50   : > { %1166 = vset.pattern.permute.xlu0 %v349_v8  ;;  %1046 = vmatpush.msra.mxu1 %v599_v25 }
  0x51   : > { %1053 = vmatpush.msra.mxu2 %v597_v27  ;;  %622 = vmatpush.msra.mxu0 %v597_v27 }
  0x52   : > { %484 = vperm.xlu1 %1163, %v1565_v5   ;;  %387 = vperm.xlu2 %1165, %v1567_v6  }
  0x53   : > { %1056 = vmatpush.msra.mxu2 %v596_v28  ;;  %1049 = vmatpush.msra.mxu1 %v598_v26 }
  0x54   : > { %623 = vmatpush.msra.mxu0 %v596_v28  ;;  %1045 = vmatpush.msra.mxu3 %v600_v23 }
  0x55   : > { %1059 = vmatpush.msra.mxu2 %v595_v29  ;;  %1052 = vmatpush.msra.mxu1 %v597_v27 }
  0x56   : > { %624 = vmatpush.msra.mxu0 %v595_v29  ;;  %1048 = vmatpush.msra.mxu3 %v599_v25 }
  0x57   : > { %1062 = vmatpush.msra.mxu2 %v594_v30  ;;  %1055 = vmatpush.msra.mxu1 %v596_v28 }
  0x58   : > { %448 = vperm.xlu0 %1166, %v1565_v5   ;;  %625 = vmatpush.msra.mxu0 %v594_v30 }
  0x59   : > { %1051 = vmatpush.msra.mxu3 %v598_v26  ;;  %1058 = vmatpush.msra.mxu1 %v595_v29 }
  0x5a   : > { %1167 = vset.pattern.permute.xlu1 %v391_v9  ;;  %1168 = vset.pattern.permute.xlu2 %v349_v8 }
  0x5b   : > { %1054 = vmatpush.msra.mxu3 %v597_v27  ;;  %1061 = vmatpush.msra.mxu1 %v594_v30 }
  0x5d   : > { %1057 = vmatpush.msra.mxu3 %v596_v28 }
  0x5f   : > { %1060 = vmatpush.msra.mxu3 %v595_v29 }
  0x60   : > { %1170 = vset.pattern.permute.xlu0 %v397_v10 }
  0x61   : > { %1063 = vmatpush.msra.mxu3 %v594_v30 }
  0x62   : > { %490 = vperm.xlu1 %1167, %v1565_v5   ;;  %351 = vperm.xlu2 %1168, %v1567_v6  }
  0x68   : > { %496 = vperm.xlu0 %1170, %v1565_v5  }
  0x6a   : > { %393 = vperm.xlu1 %1167, %v1567_v6   ;;  %1169 = vset.pattern.permute.xlu2 %v355_v11 }
  0x70   : > { %1175 = vset.pattern.permute.xlu0 %v361_v12 }
  0x72   : > { %1171 = vset.pattern.permute.xlu1 %v355_v11  ;;  %454 = vperm.xlu2 %1169, %v1565_v5  }
  0x78   : > { %363 = vperm.xlu0 %1175, %v1567_v6  }
  0x7a   : > { %357 = vperm.xlu1 %1171, %v1567_v6   ;;  %1172 = vset.pattern.permute.xlu2 %v397_v10 }
  0x80   : > { %1179 = vset.pattern.permute.xlu0 %v1590_v20 }
  0x82   : > { %1173 = vset.pattern.permute.xlu1 %v361_v12  ;;  %399 = vperm.xlu2 %1172, %v1567_v6  }
  0x88   : > { %411 = vperm.xlu0 %1179, %v1567_v6  }
  0x8a   : > { %460 = vperm.xlu1 %1173, %v1565_v5   ;;  %1174 = vset.pattern.permute.xlu2 %v403_v24 }
  0x90   : > { %1182 = vset.pattern.permute.xlu0 %v379_v32 }
  0x92   : > { %1176 = vset.pattern.permute.xlu1 %v403_v24  ;;  %502 = vperm.xlu2 %1174, %v1565_v5  }
  0x98   : > { %478 = vperm.xlu0 %1182, %v1565_v5  }
  0x9a   : > { %405 = vperm.xlu1 %1176, %v1567_v6   ;;  %1177 = vset.pattern.permute.xlu2 %v367_v31 }
  0x9c   : > { %v346_v33 = vpop.permute.xlu2 %345 }
  0x9d   : > { %vm531_vm4 = vcmp.eq.s32.totalorder %v346_v33, %v1607_v34 }
  0xa0   : > { %1186 = vset.pattern.permute.xlu0 %v427_v41 }
  0xa2   : > { %1178 = vset.pattern.permute.xlu1 %v1590_v20  ;;  %466 = vperm.xlu2 %1177, %v1565_v5  }
  0xa8   : > { %429 = vperm.xlu0 %1186, %v1567_v6  }
  0xaa   : > { %508 = vperm.xlu1 %1178, %v1565_v5   ;;  %369 = vperm.xlu2 %1177, %v1567_v6  }
  0xac   : > { %v388_v35 = vpop.permute.xlu2 %387 }
  0xad   : > { %vm538_vm0 = vcmp.eq.s32.totalorder %v388_v35, %v1607_v34 }
  0xae   : > { %987 = vmatmul.msk.f32.vlgmr.msra.gmra.mxu1 %vm538_vm0, %v1409_v38 }
  0xb2   : > { %v437_v39 = vpop.permute.xlu0 %436  ;;  %1180 = vset.pattern.permute.xlu1 %v373_v36  ;;  %1181 = vset.pattern.permute.xlu2 %v415_v37 }
  0xb3   : > { %vm546_vm1 = vcmp.eq.s32.totalorder %v437_v39, %v1607_v34 }
  0xb4   : > { %995 = vmatmul.msk.f32.vlgmr.msra.gmra.mxu2 %vm546_vm1, %v1409_v38  ;;  %v443_v40 = vpop.permute.xlu1 %442 }
  0xb5   : > { %vm547_vm2 = vcmp.eq.s32.totalorder %v443_v40, %v1607_v34 }
  0xba   : > { %472 = vperm.xlu1 %1180, %v1565_v5   ;;  %v340_v42 = vpop.permute.xlu0 %339  ;;  %514 = vperm.xlu2 %1181, %v1565_v5  }
  0xbb   : > { %vm530_vm3 = vcmp.eq.s32.totalorder %v340_v42, %v1607_v34 }
  0xbc   : > { %996 = vmatmul.msk.f32.gmra.mxu2 %vm547_vm2, %v1409_v38  ;;  %979 = vmatmul.msk.f32.vlgmr.msra.gmra.mxu0 %vm530_vm3, %v1409_v38  ;;  %v352_v44 = vpop.permute.xlu2 %351 }
  0xbd   : > { %vm532_vm6 = vcmp.eq.s32.totalorder %v352_v44, %v1607_v34 }
  0xc2   : > { %375 = vperm.xlu1 %1180, %v1567_v6   ;;  %417 = vperm.xlu2 %1181, %v1567_v6  }
  0xc4   : > { %v485_v43 = vpop.permute.xlu1 %484  ;;  %980 = vmatmul.msk.f32.gmra.mxu0 %vm531_vm4, %v1409_v38 }
  0xc5   : > { %vm554_vm5 = vcmp.eq.s32.totalorder %v485_v43, %v1607_v34 }
  0xc6   : > { %1003 = vmatmul.msk.f32.vlgmr.msra.gmra.mxu3 %vm554_vm5, %v1409_v38 }
  0xca   : > { %1183 = vset.pattern.permute.xlu1 %v421_v45  ;;  %v449_v46 = vpop.permute.xlu0 %448  ;;  %1184 = vset.pattern.permute.xlu2 %v379_v32 }
  0xcb   : > { %vm548_vm7 = vcmp.eq.s32.totalorder %v449_v46, %v1607_v34 }
  0xcc   : > { %997 = vmatmul.msk.f32.gmra.mxu2 %vm548_vm7, %v1409_v38  ;;  %981 = vmatmul.msk.f32.gmra.mxu0 %vm532_vm6, %v1409_v38  ;;  %v455_v47 = vpop.permute.xlu2 %454 }
  0xcd   : > { %vm549_vm8 = vcmp.eq.s32.totalorder %v455_v47, %v1607_v34 }
  0xd2   : > { %520 = vperm.xlu1 %1183, %v1565_v5   ;;  %381 = vperm.xlu2 %1184, %v1567_v6  }
  0xd4   : > { %v491_v48 = vpop.permute.xlu1 %490  ;;  %998 = vmatmul.msk.f32.gmra.mxu2 %vm549_vm8, %v1409_v38 }
  0xd5   : > { %vm555_vm9 = vcmp.eq.s32.totalorder %v491_v48, %v1607_v34 }
  0xd6   : > { %1004 = vmatmul.msk.f32.gmra.mxu3 %vm555_vm9, %v1409_v38 }
  0xda   : > { %423 = vperm.xlu1 %1183, %v1567_v6   ;;  %1185 = vset.pattern.permute.xlu2 %v427_v41  ;;  %v497_v49 = vpop.permute.xlu0 %496 }
  0xdb   : > { %vm556_vm10 = vcmp.eq.s32.totalorder %v497_v49, %v1607_v34 }
  0xdc   : > { %v394_v50 = vpop.permute.xlu1 %393  ;;  %v400_v51 = vpop.permute.xlu2 %399 }
  0xdd   : > { %vm539_vm11 = vcmp.eq.s32.totalorder %v394_v50, %v1607_v34  ;;  %vm540_vm12 = vcmp.eq.s32.totalorder %v400_v51, %v1607_v34 }
  0xde   : > { %988 = vmatmul.msk.f32.gmra.mxu1 %vm539_vm11, %v1409_v38  ;;  %1005 = vmatmul.msk.f32.gmra.mxu3 %vm556_vm10, %v1409_v38 }
  0xe2   : > { %526 = vperm.xlu2 %1185, %v1565_v5  }
  0xe6   : > { %989 = vmatmul.msk.f32.gmra.mxu1 %vm540_vm12, %v1409_v38 }
  0xea   : > { %v364_v54 = vpop.permute.xlu0 %363 }
  0xeb   : > { %vm534_vm15 = vcmp.eq.s32.totalorder %v364_v54, %v1607_v34 }
  0xec   : > { %v358_v52 = vpop.permute.xlu1 %357  ;;  %v503_v53 = vpop.permute.xlu2 %502 }
  0xed   : > { %vm533_vm13 = vcmp.eq.s32.totalorder %v358_v52, %v1607_v34  ;;  %vm557_vm14 = vcmp.eq.s32.totalorder %v503_v53, %v1607_v34 }
  0xee   : > { %982 = vmatmul.msk.f32.gmra.mxu0 %vm533_vm13, %v1409_v38  ;;  %1006 = vmatmul.msk.f32.gmra.mxu3 %vm557_vm14, %v1409_v38 }
  0xf6   : > { %983 = vmatmul.msk.f32.gmra.mxu0 %vm534_vm15, %v1409_v38 }
  0xfa   : > { %v412_v59 = vpop.permute.xlu0 %411 }
  0xfb   : > { %vm542_vm4 = vcmp.eq.s32.totalorder %v412_v59, %v1607_v34 }
  0xfc   : > { %v461_v55 = vpop.permute.xlu1 %460  ;;  %v467_v56 = vpop.permute.xlu2 %466 }
  0xfd   : > { %vm550_vm0 = vcmp.eq.s32.totalorder %v461_v55, %v1607_v34  ;;  %vm551_vm1 = vcmp.eq.s32.totalorder %v467_v56, %v1607_v34 }
  0xfe   : > { %999 = vmatmul.msk.f32.gmra.mxu2 %vm550_vm0, %v1409_v38  ;;  %vm768_vm0 = vcmask 1041409  }
 0x104   : > { %v370_v57 = vpop.permute.xlu2 %369 }
 0x105   : > { %vm535_vm2 = vcmp.eq.s32.totalorder %v370_v57, %v1607_v34 }
 0x106   : > { %984 = vmatmul.msk.f32.gmra.mxu0 %vm535_vm2, %v1409_v38  ;;  %1000 = vmatmul.msk.f32.gmra.mxu2 %vm551_vm1, %v1409_v38 }
 0x10a   : > { %v479_v0 = vpop.permute.xlu0 %478 }
 0x10b   : > { %vm553_vm9 = vcmp.eq.s32.totalorder %v479_v0, %v1607_v34 }
 0x10c   : > { %v406_v58 = vpop.permute.xlu1 %405 }
 0x10d   : > { %vm541_vm3 = vcmp.eq.s32.totalorder %v406_v58, %v1607_v34 }
 0x10e   : > { %990 = vmatmul.msk.f32.gmra.mxu1 %vm541_vm3, %v1409_v38 }
 0x114   : > { %v515_v60 = vpop.permute.xlu2 %514 }
 0x115   : > { %vm559_vm7 = vcmp.eq.s32.totalorder %v515_v60, %v1607_v34 }
 0x116   : > { %991 = vmatmul.msk.f32.gmra.mxu1 %vm542_vm4, %v1409_v38 }
 0x11a   : > { %v430_v6 = vpop.permute.xlu0 %429 }
 0x11b   : > { %vm545_vm15 = vcmp.eq.s32.totalorder %v430_v6, %v1607_v34 }
 0x11c   : > { %v509_v61 = vpop.permute.xlu1 %508  ;;  %v418_v62 = vpop.permute.xlu2 %417 }
 0x11d   : > { %vm558_vm5 = vcmp.eq.s32.totalorder %v509_v61, %v1607_v34  ;;  %vm543_vm6 = vcmp.eq.s32.totalorder %v418_v62, %v1607_v34 }
 0x11e   : > { %1007 = vmatmul.msk.f32.gmra.mxu3 %vm558_vm5, %v1409_v38  ;;  %992 = vmatmul.msk.f32.gmra.mxu1 %vm543_vm6, %v1409_v38 }
 0x126   : > { %1008 = vmatmul.msk.f32.gmra.mxu3 %vm559_vm7, %v1409_v38 }
 0x12b   : > { %v651_v14 = vpop.f32.mrf.mxu1 }
 0x12c   : > { %v473_v63 = vpop.permute.xlu1 %472  ;;  %v382_v2 = vpop.permute.xlu2 %381 }
 0x12d   : > { %vm552_vm8 = vcmp.eq.s32.totalorder %v473_v63, %v1607_v34  ;;  %vm537_vm11 = vcmp.eq.s32.totalorder %v382_v2, %v1607_v34 }
 0x12e   : > { %1001 = vmatmul.msk.f32.gmra.mxu2 %vm552_vm8, %v1409_v38 }
 0x134   : > { %v376_v1 = vpop.permute.xlu1 %375 }
 0x135   : > { %vm536_vm10 = vcmp.eq.s32.totalorder %v376_v1, %v1607_v34 }
 0x136   : > { %985 = vmatmul.msk.f32.gmra.mxu0 %vm536_vm10, %v1409_v38  ;;  %1002 = vmatmul.msk.f32.gmra.mxu2 %vm553_vm9, %v1409_v38 }
 0x137   : > { %v675_v7 = vpop.f32.mrf.mxu2 }
 0x139   : > { %v627_v8 = vpop.f32.mrf.mxu0 }
 0x13c   : > { %v527_v4 = vpop.permute.xlu2 %526 }
 0x13d   : > { %vm561_vm13 = vcmp.eq.s32.totalorder %v527_v4, %v1607_v34 }
 0x13e   : > { %986 = vmatmul.msk.f32.gmra.mxu0 %vm537_vm11, %v1409_v38 }
 0x13f   : > { %v678_v9 = vpop.f32.mrf.mxu2 }
 0x141   : > { %v630_v10 = vpop.f32.mrf.mxu0 }
 0x144   : > { %v521_v3 = vpop.permute.xlu1 %520 }
 0x145   : > { %vm560_vm12 = vcmp.eq.s32.totalorder %v521_v3, %v1607_v34 }
 0x146   : > { %1009 = vmatmul.msk.f32.gmra.mxu3 %vm560_vm12, %v1409_v38 }
 0x149   : > { %v699_v12 = vpop.f32.mrf.mxu3  ;;  %v633_v13 = vpop.f32.mrf.mxu0 }
 0x14a   : > { %v724_v35 = vmax.f32 %v627_v8, %v633_v13 }
 0x14c   : > { %v424_v5 = vpop.permute.xlu1 %423 }
 0x14d   : > { %vm544_vm14 = vcmp.eq.s32.totalorder %v424_v5, %v1607_v34 }
 0x14e   : > { %993 = vmatmul.msk.f32.gmra.mxu1 %vm544_vm14, %v1409_v38  ;;  %1010 = vmatmul.msk.f32.gmra.mxu3 %vm561_vm13, %v1409_v38 }
 0x14f   : > { %v681_v11 = vpop.f32.mrf.mxu2 }
 0x150   : > { %v745_v31 = vmax.f32 %v675_v7, %v681_v11 }
 0x156   : > { %994 = vmatmul.msk.f32.gmra.mxu1 %vm545_vm15, %v1409_v38 }
 0x157   : > { %v684_v15 = vpop.f32.mrf.mxu2 }
 0x158   : > { %v746_v32 = vmax.f32 %v678_v9, %v684_v15 }
 0x159   : > { %v702_v16 = vpop.f32.mrf.mxu3 }
 0x15b   : > { %v654_v18 = vpop.f32.mrf.mxu1 }
 0x161   : > { %v705_v20 = vpop.f32.mrf.mxu3 }
 0x163   : > { %v657_v21 = vpop.f32.mrf.mxu1 }
 0x16b   : > { %v636_v17 = vpop.f32.mrf.mxu0 }
 0x16c   : > { %v725_v36 = vmax.f32 %v630_v10, %v636_v17 }
 0x171   : > { %v708_v26 = vpop.f32.mrf.mxu3 }
 0x173   : > { %v639_v22 = vpop.f32.mrf.mxu0 }
 0x174   : > { %v726_v41 = vmax.f32 %v724_v35, %v639_v22 }
 0x181   : > { %v687_v19 = vpop.f32.mrf.mxu2 }
 0x182   : > { %v747_v37 = vmax.f32 %v745_v31, %v687_v19 }
 0x183   : > { %v642_v25 = vpop.f32.mrf.mxu0 }
 0x184   : > { %v727_v42 = vmax.f32 %v725_v36, %v642_v25 }
 0x189   : > { %v690_v23 = vpop.f32.mrf.mxu2 }
 0x18a   : > { %v748_v38 = vmax.f32 %v746_v32, %v690_v23 }
 0x18b   : > { %v660_v24 = vpop.f32.mrf.mxu1 }
 0x193   : > { %v663_v28 = vpop.f32.mrf.mxu1 }
 0x19b   : > { %v666_v39 = vpop.f32.mrf.mxu1 }
 0x1a1   : > { %v711_v29 = vpop.f32.mrf.mxu3 }
 0x1a9   : > { %v714_v33 = vpop.f32.mrf.mxu3 }
 0x1b1   : > { %v693_v27 = vpop.f32.mrf.mxu2 }
 0x1b2   : > { %v749_v43 = vmax.f32 %v747_v37, %v693_v27 }
 0x1b3   : > { %v645_v30 = vpop.f32.mrf.mxu0 }
 0x1b4   : > { %v728_v45 = vmax.f32 %v726_v41, %v645_v30  ;;  %v751_v47 = vmax.f32 %v749_v43, %v699_v12 }
 0x1b6   : > { %v730_v50 = vmax.f32 %v728_v45, %v651_v14  ;;  %v753_v53 = vmax.f32 %v751_v47, %v705_v20 }
 0x1b8   : > { %v732_v55 = vmax.f32 %v730_v50, %v657_v21  ;;  %v755_v57 = vmax.f32 %v753_v53, %v711_v29 }
 0x1b9   : > { %v696_v34 = vpop.f32.mrf.mxu2 }
 0x1ba   : > { %v750_v44 = vmax.f32 %v748_v38, %v696_v34  ;;  %v734_v61 = vmax.f32 %v732_v55, %v663_v28 }
 0x1bb   : > { %v648_v40 = vpop.f32.mrf.mxu0 }
 0x1bc   : > { %v729_v46 = vmax.f32 %v727_v42, %v648_v40  ;;  %v752_v48 = vmax.f32 %v750_v44, %v702_v16  ;;  %v723_v16 = vld [vmem:[#allocation2] sm:$0x3] }
 0x1be   : > { %v731_v51 = vmax.f32 %v729_v46, %v654_v18  ;;  %v754_v54 = vmax.f32 %v752_v48, %v708_v26 }
 0x1c0   : > { %v733_v56 = vmax.f32 %v731_v51, %v660_v24  ;;  %v756_v58 = vmax.f32 %v754_v54, %v714_v33 }
 0x1c2   : > { %v735_v63 = vmax.f32 %v733_v56, %v666_v39 }
 0x1c9   : > { %v717_v49 = vpop.f32.mrf.mxu3 }
 0x1ca   : > { %v757_v60 = vmax.f32 %v755_v57, %v717_v49 }
 0x1cb   : > { %v669_v52 = vpop.f32.mrf.mxu1 }
 0x1cc   : > { %v736_v1 = vmax.f32 %v734_v61, %v669_v52 }
 0x1d1   : > { %v720_v59 = vpop.f32.mrf.mxu3 }
 0x1d2   : > { %v758_v62 = vmax.f32 %v756_v58, %v720_v59 }
 0x1d3   : > { %v672_v0 = vpop.f32.mrf.mxu1 }
 0x1d4   : > { %v759_v2 = vmax.f32 %v757_v60, %v758_v62  ;;  %v737_v3 = vmax.f32 %v735_v63, %v672_v0 }
 0x1d6   : > { %v760_v4 = vrot.slane %v759_v2, 4  ;;  %v738_v5 = vmax.f32 %v736_v1, %v737_v3 }
 0x1d8   : > { %v761_v6 = vmax.f32 %v759_v2, %v760_v4  ;;  %v739_v7 = vrot.slane %v738_v5, 4 }
 0x1da   : > { %v762_v8 = vrot.slane %v761_v6, 2  ;;  %v740_v9 = vmax.f32 %v738_v5, %v739_v7 }
 0x1dc   : > { %v763_v10 = vmax.f32 %v761_v6, %v762_v8  ;;  %v741_v11 = vrot.slane %v740_v9, 2 }
 0x1de   : > { %v764_v12 = vrot.slane %v763_v10, 1  ;;  %v742_v13 = vmax.f32 %v740_v9, %v741_v11 }
 0x1e0   : > { %v743_v14 = vrot.slane %v742_v13, 1  ;;  %v765_v15 = vmax.f32 %v763_v10, %v764_v12 }
 0x1e2   : > { %v744_v17 = vmax.f32 %v742_v13, %v743_v14 }
 0x1e3   : > { %776 = sbr.rel (%p1011_p1) target bundleno = 779 (0x30b), region = 68 }
 0x1e4   : > { %v769_v18 = vsel %vm768_vm0, %v765_v15, %v744_v17 }
 0x1e5   : > { %v771_v19 = vmax.f32 %v723_v16, %v769_v18 }
 0x1e7   : > { %772 = vst [vmem:[#allocation2] sm:$0x3] %v771_v19 }
 0x1e8   : > { %v795_v20 = vld [vmem:[#allocation8 + $0x78] sm:$0xff]  ;;  %v794_v21 = vld [vmem:[#allocation8 + $0x70] sm:$0xff]  ;;  %v793_v22 = vld [vmem:[#allocation8 + $0x68] sm:$0xff] }
 0x1e9   : > { %800 = vmatpush.msra.mxu0 %v795_v20  ;;  %v792_v23 = vld [vmem:[#allocation8 + $0x60] sm:$0xff]  ;;  %v836_v24 = vld [vmem:[#allocation9 + $0x78] sm:$0xff]  ;;  %v835_v26 = vld [vmem:[#allocation9 + $0x70] sm:$0xff] }
 0x1ea   : > { %v791_v25 = vld [vmem:[#allocation8 + $0x58] sm:$0xff]  ;;  %841 = vmatpush.msra.mxu1 %v836_v24  ;;  %v834_v27 = vld [vmem:[#allocation9 + $0x68] sm:$0xff]  ;;  %v790_v28 = vld [vmem:[#allocation8 + $0x50] sm:$0xff] }
 0x1eb   : > { %801 = vmatpush.msra.mxu0 %v794_v21  ;;  %v833_v29 = vld [vmem:[#allocation9 + $0x60] sm:$0xff]  ;;  %v789_v30 = vld [vmem:[#allocation8 + $0x48] sm:$0xff]  ;;  %v832_v31 = vld [vmem:[#allocation9 + $0x58] sm:$0xff] }
 0x1ec   : > { %842 = vmatpush.msra.mxu1 %v835_v26  ;;  %v788_v32 = vld [vmem:[#allocation8 + $0x40] sm:$0xff]  ;;  %v831_v33 = vld [vmem:[#allocation9 + $0x50] sm:$0xff]  ;;  %v787_v34 = vld [vmem:[#allocation8 + $0x38] sm:$0xff] }
 0x1ed   : > { %802 = vmatpush.msra.mxu0 %v793_v22  ;;  %v830_v35 = vld [vmem:[#allocation9 + $0x48] sm:$0xff]  ;;  %v786_v36 = vld [vmem:[#allocation8 + $0x30] sm:$0xff]  ;;  %v829_v38 = vld [vmem:[#allocation9 + $0x40] sm:$0xff] }
 0x1ee   : > { %843 = vmatpush.msra.mxu1 %v834_v27  ;;  %v777_v37 = vld [vmem:[#allocation2] sm:$0x3]  ;;  %v785_v39 = vld [vmem:[#allocation8 + $0x28] sm:$0xff]  ;;  %v784_v41 = vld [vmem:[#allocation8 + $0x20] sm:$0xff] }
 0x1ef   : > { %803 = vmatpush.msra.mxu0 %v792_v23  ;;  %1189 = vtanh.f32 %v777_v37  ;;  %v828_v40 = vld [vmem:[#allocation9 + $0x38] sm:$0xff]  ;;  %v827_v42 = vld [vmem:[#allocation9 + $0x30] sm:$0xff]  ;;  %v826_v44 = vld [vmem:[#allocation9 + $0x28] sm:$0xff] }
 0x1f0   : > { %844 = vmatpush.msra.mxu1 %v833_v29  ;;  %v783_v43 = vld [vmem:[#allocation8 + $0x18] sm:$0xff]  ;;  %v782_v45 = vld [vmem:[#allocation8 + $0x10] sm:$0xff]  ;;  %v825_v47 = vld [vmem:[#allocation9 + $0x20] sm:$0xff] }
 0x1f1   : > { %804 = vmatpush.msra.mxu0 %v791_v25  ;;  %v781_v48 = vld [vmem:[#allocation8 + $0x8] sm:$0xff]  ;;  %v824_v49 = vld [vmem:[#allocation9 + $0x18] sm:$0xff]  ;;  %v780_v50 = vld [vmem:[#allocation8] sm:$0xff] }
 0x1f2   : > { %845 = vmatpush.msra.mxu1 %v832_v31  ;;  %v823_v52 = vld [vmem:[#allocation9 + $0x10] sm:$0xff]  ;;  %v822_v53 = vld [vmem:[#allocation9 + $0x8] sm:$0xff]  ;;  %v821_v54 = vld [vmem:[#allocation9] sm:$0xff] }
 0x1f3   : > { %805 = vmatpush.msra.mxu0 %v790_v28  ;;  %v1187_v55 = vld [vmem:[%s1719_s3] ss:$0 sm:$0xff] }
 0x1f4   : > { %846 = vmatpush.msra.mxu1 %v831_v33  ;;  %v1188_v59 = vld [vmem:[%s1721_s5] ss:$0 sm:$0xff] }
 0x1f5   : > { %806 = vmatpush.msra.mxu0 %v789_v30  ;;  %v1190_v46 = vpop.eup %1189 }
 0x1f6   : > { %847 = vmatpush.msra.mxu1 %v830_v35  ;;  %v779_v51 = vmax.f32 %v1190_v46, 0.0 }
 0x1f7   : > { %807 = vmatpush.msra.mxu0 %v788_v32 }
 0x1f8   : > { %848 = vmatpush.msra.mxu1 %v829_v38 }
 0x1f9   : > { %808 = vmatpush.msra.mxu0 %v787_v34 }
 0x1fa   : > { %849 = vmatpush.msra.mxu1 %v828_v40 }
 0x1fb   : > { %809 = vmatpush.msra.mxu0 %v786_v36 }
 0x1fc   : > { %850 = vmatpush.msra.mxu1 %v827_v42 }
 0x1fd   : > { %810 = vmatpush.msra.mxu0 %v785_v39 }
 0x1fe   : > { %851 = vmatpush.msra.mxu1 %v826_v44 }
 0x1ff   : > { %811 = vmatpush.msra.mxu0 %v784_v41 }
 0x200   : > { %852 = vmatpush.msra.mxu1 %v825_v47 }
 0x201   : > { %812 = vmatpush.msra.mxu0 %v783_v43 }
 0x202   : > { %853 = vmatpush.msra.mxu1 %v824_v49 }
 0x203   : > { %813 = vmatpush.msra.mxu0 %v782_v45 }
 0x204   : > { %854 = vmatpush.msra.mxu1 %v823_v52 }
 0x205   : > { %814 = vmatpush.msra.mxu0 %v781_v48 }
 0x206   : > { %855 = vmatpush.msra.mxu1 %v822_v53 }
 0x207   : > { %815 = vmatpush.msra.mxu0 %v780_v50 }
 0x208   : > { %816 = vmatmul.f32.vlgmr.msra.gmra.mxu0 %v779_v51  ;;  %856 = vmatpush.msra.mxu1 %v821_v54 }
 0x285   : > { %v817_v56 = vpop.f32.mrf.mxu0 }
 0x286   : > { %v818_v57 = vadd.f32 %v1187_v55, %v817_v56 }
 0x288   : > { %v820_v58 = vmax.f32 %v818_v57, 0.0 }
 0x28a   : > { %857 = vmatmul.f32.vlgmr.msra.gmra.mxu1 %v820_v58 }
 0x307   : > { %v858_v60 = vpop.f32.mrf.mxu1 }
 0x308   : > { %v859_v61 = vadd.f32 %v1188_v59, %v858_v60 }
 0x30a   : > { %861 = vst [vmem:[#allocation11] sm:$0x3] %v859_v61 }
 0x30b PF: > { %s1731_s8 = sadd.s32 4294967295, %s1401_s26   ;;  %s872_s14 = sshll.u32 %s1722_s6, 4  ;;  %s873_s14 = int_to_ptr.hbm [resolvable:$true] %s872_s14 }
 0x30c   : > { %p1103_p3 = scmp.eq.s32.totalorder %s1731_s8, 1  ;;  %s1410_s15 = smov [#allocation11]  }
 0x30d   : > { %s870_s17 = sshll.u32 %s1410_s15, 4  ;;  %s871_s17 = int_to_ptr.vmem [resolvable:$true] %s870_s17 }
 0x30e   : > { %1079 = dma.vmem_to_hbm [thread:$0]  (%p1103_p3), %s871_s17, 32, %s873_s14, [#allocation5]  }
 0x30f   : > { %1376 = dma.done.wait (%p1103_p3), [#allocation5], 32  }
 0x310   : > { %1378 = vsyncadd (%p1103_p3), [#allocation5], 4294967264 }
 0x311 PF: > { %s22_s26 = sadd.s32 1, %s1401_s26   ;;  %s1732_s21 = smov %s1385_s22 }
 0x312   : > { %p19_p4 = scmp.ge.s32.totalorder %s22_s26, 4   ;;  %s1733_s22 = smov %s1389_s23 }
 0x313   : > { %s1734_s23 = smov %s1536_s16  ;;  %s1735_s24 = smov %s1397_s25 }
 0x314   : > { %s1736_s25 = smov %s1738_s7  ;;  %21 = sbr.rel (!%p19_p4) target bundleno = 9 (0x9), region = 102 }
 0x319   :  { %886 = vsyncpa [#allocation4], 1 }
 0x31a   :  { %888 = vsyncpa [#allocation4 + $0x1], 1 }
 0x31b   :  { %889 = vsyncpa [#allocation7], 1 }
 0x31c   :  { %890 = vsyncpa [#allocation10], 1 }
 0x31d   :  { %891 = vsyncpa [#allocation5], 1 }
 0x31e   :  { %893 = vsyncpa [#allocation5 + $0x1], 1 }

</bundles_post_ra>
